<compile_context>
chip_gen: v6e
topology: v6e:2x2x1
jax: 0.10.0
libtpu: 0.0.40
codegen_flags: <defaults>
</compile_context>

<pallas_src>
import functools

import jax
import jax.numpy as jnp
from jax.experimental import pallas as pl
from jax.experimental.pallas import tpu as pltpu

NEG_SLOPE = 0.1   # LeakyReLU(0.1)
BN_EPS = 1e-5     # nn.BatchNorm2d default


def _lrelu(v):
    return jnp.where(v >= 0, v, NEG_SLOPE * v)


def _residual_block_kernel(x_ref, m_ref, w1_ref, w2_ref, s1_ref, b1_ref,
                           s2_ref, b2_ref, o_ref, *, width, channels,
                           accumulate):
    c = channels
    x = x_ref[0].astype(jnp.float32)            # (C, HW) f32, lane-dense
    hw = x.shape[1]

    # Precomputed boundary masks, (1, HW) each, broadcast over sublanes.
    valid_l = m_ref[0:1, :]                      # col >= 1      (tap dx = -1)
    valid_r = m_ref[1:2, :]                      # col <= W - 2  (tap dx = +1)
    valid_t = m_ref[2:3, :]                      # row >= 1      (tap dy = -1)
    valid_b = m_ref[3:4, :]                      # row <= H - 2  (tap dy = +1)

    def _roll(v, shift):
        # tap[p] = v[p + off]  <=>  pltpu.roll(v, -off); normalize to [0, hw).
        return pltpu.roll(v, shift % hw, axis=1)

    def conv3x3(inp, w_ref):
        # inp: (C, HW) f32.  w_ref: (C_out, 9*C) bf16, column order (kh, kw, ci).
        if not accumulate:
            # 4 rolls total: +-1 on (C, HW), +-W on the stacked (3C, HW).
            cl = _roll(inp, 1) * valid_l                       # in[p-1]  kw=0
            cr = _roll(inp, -1) * valid_r                      # in[p+1]  kw=2
            cols = jnp.concatenate([cl, inp, cr], axis=0)      # (3C, HW)
            up = _roll(cols, width) * valid_t                  # kh=0
            down = _roll(cols, -width) * valid_b               # kh=2
            patches = jnp.concatenate([up, cols, down], axis=0)  # (9C, HW)
            return jnp.dot(w_ref[...], patches.astype(jnp.bfloat16),
                           preferred_element_type=jnp.float32)
        # Large-C path: 9 accumulating dots, no (9C, HW) materialization.
        acc = jnp.zeros((c, hw), jnp.float32)
        for kh in range(3):
            if kh == 0:
                hv = _roll(inp, width) * valid_t
            elif kh == 2:
                hv = _roll(inp, -width) * valid_b
            else:
                hv = inp
            for kw in range(3):
                if kw == 0:
                    tap = _roll(hv, 1) * valid_l
                elif kw == 2:
                    tap = _roll(hv, -1) * valid_r
                else:
                    tap = hv
                idx = kh * 3 + kw
                acc = acc + jnp.dot(w_ref[:, idx * c:(idx + 1) * c],
                                    tap.astype(jnp.bfloat16),
                                    preferred_element_type=jnp.float32)
        return acc

    h = _lrelu(x)                                  # act(x)
    h = _lrelu(conv3x3(h, w1_ref))                 # conv1 (Conv3x3 + LeakyReLU)
    h = _lrelu(h * s1_ref[...] + b1_ref[...])      # bn1, act
    h = _lrelu(conv3x3(h, w2_ref))                 # conv2 (Conv3x3 + LeakyReLU)
    h = h * s2_ref[...] + b2_ref[...]              # bn2
    o_ref[0] = (h + x).astype(o_ref.dtype)         # residual add


def residual_block_forward(x, w1, w2,
                           gamma1, beta1, mean1, var1,
                           gamma2, beta2, mean2, var2):
    """Pallas forward of ResidualBlock (inference-mode BatchNorm)."""
    n, c, height, width = x.shape
    hw = height * width

    # Free metadata reshape; keep native dtype (no f32 upcast in HBM).
    x_flat = x.reshape(n, c, hw)

    # (C_out, C_in, 3, 3) -> (C_out, 9*C_in) bf16, column order (kh, kw, ci)
    # matching the patch stacking in the kernel.
    w1_flat = jnp.transpose(w1, (0, 2, 3, 1)).reshape(c, 9 * c).astype(jnp.bfloat16)
    w2_flat = jnp.transpose(w2, (0, 2, 3, 1)).reshape(c, 9 * c).astype(jnp.bfloat16)

    # Fold inference BatchNorm into per-channel scale/shift, shaped (C, 1).
    inv1 = gamma1.astype(jnp.float32) / jnp.sqrt(var1.astype(jnp.float32) + BN_EPS)
    inv2 = gamma2.astype(jnp.float32) / jnp.sqrt(var2.astype(jnp.float32) + BN_EPS)
    s1 = inv1.reshape(c, 1)
    b1 = (beta1.astype(jnp.float32) - mean1.astype(jnp.float32) * inv1).reshape(c, 1)
    s2 = inv2.reshape(c, 1)
    b2 = (beta2.astype(jnp.float32) - mean2.astype(jnp.float32) * inv2).reshape(c, 1)

    # Boundary masks, built once on host side: rows are
    # [col>=1, col<=W-2, row>=1, row<=H-2], each of length HW.
    pos = jnp.arange(hw, dtype=jnp.int32)
    col = pos % width
    masks = jnp.stack([col >= 1,
                       col <= width - 2,
                       pos >= width,
                       pos < hw - width], axis=0).astype(jnp.float32)

    # Shape-dependent conv lowering: single (9C, HW) matmul for small C,
    # 9 accumulating dots once the patch buffer would blow VMEM.
    use_accumulate = c >= 128

    kernel = functools.partial(_residual_block_kernel, width=width,
                               channels=c, accumulate=use_accumulate)

    # Explicit VMEM budget: double-buffered in/out blocks + weights + masks
    # + intermediates (patch buffer or accumulate-form working set).
    itemsize = jnp.dtype(x.dtype).itemsize
    io_block = c * hw * itemsize
    weights_b = 2 * c * 9 * c * 2
    if use_accumulate:
        interm = 8 * c * hw * 4                      # a few (C, HW) f32 temps
    else:
        interm = (3 + 9 + 4) * c * hw * 4 + 9 * c * hw * 2
    est = 2 * 2 * io_block + weights_b + 4 * hw * 4 + 4 * c * 4 + interm
    vmem_limit = min(max(int(est * 1.5), 32 * 1024 * 1024), 64 * 1024 * 1024)

    out_flat = pl.pallas_call(
        kernel,
        out_shape=jax.ShapeDtypeStruct((n, c, hw), x.dtype),
        grid=(n,),
        in_specs=[
            pl.BlockSpec((1, c, hw), lambda b: (b, 0, 0)),   # x (one image)
            pl.BlockSpec((4, hw), lambda b: (0, 0)),         # boundary masks
            pl.BlockSpec((c, 9 * c), lambda b: (0, 0)),      # conv1 weights (bf16)
            pl.BlockSpec((c, 9 * c), lambda b: (0, 0)),      # conv2 weights (bf16)
            pl.BlockSpec((c, 1), lambda b: (0, 0)),          # bn1 scale
            pl.BlockSpec((c, 1), lambda b: (0, 0)),          # bn1 shift
            pl.BlockSpec((c, 1), lambda b: (0, 0)),          # bn2 scale
            pl.BlockSpec((c, 1), lambda b: (0, 0)),          # bn2 shift
        ],
        out_specs=pl.BlockSpec((1, c, hw), lambda b: (b, 0, 0)),
        input_output_aliases={0: 0},                          # reuse x's buffer
        compiler_params=pltpu.CompilerParams(
            dimension_semantics=("parallel",),   # batch axis -> both TCs on v7x
            vmem_limit_bytes=vmem_limit,
        ),
    )(x_flat, masks, w1_flat, w2_flat, s1, b1, s2, b2)

    return out_flat.reshape(n, c, height, width)


def _reference_forward(x, w1, w2, g1, be1, m1, v1, g2, be2, m2, v2):
    """Pure-JAX reference mirroring the PyTorch module (eval-mode BN)."""
    def lrelu(t):
        return jnp.where(t >= 0, t, NEG_SLOPE * t)

    def conv(t, w):
        return jax.lax.conv_general_dilated(
            t, w, window_strides=(1, 1), padding=((1, 1), (1, 1)),
            dimension_numbers=("NCHW", "OIHW", "NCHW"),
            precision=jax.lax.Precision.HIGHEST)

    def bn(t, g, b, m, v):
        g = g[None, :, None, None]
        b = b[None, :, None, None]
        m = m[None, :, None, None]
        v = v[None, :, None, None]
        return (t - m) / jnp.sqrt(v + BN_EPS) * g + b

    h = lrelu(x)
    h = lrelu(bn(lrelu(conv(h, w1)), g1, be1, m1, v1))
    h = bn(lrelu(conv(h, w2)), g2, be2, m2, v2)
    return h + x


if __name__ == "__main__":
    key = jax.random.PRNGKey(0)
    ks = jax.random.split(key, 11)
    N, C, H, W = 2, 4, 16, 16

    x = jax.random.normal(ks[0], (N, C, H, W), jnp.float32)
    w1 = 0.2 * jax.random.normal(ks[1], (C, C, 3, 3), jnp.float32)
    w2 = 0.2 * jax.random.normal(ks[2], (C, C, 3, 3), jnp.float32)
    gamma1 = 1.0 + 0.1 * jax.random.normal(ks[3], (C,), jnp.float32)
    beta1 = 0.1 * jax.random.normal(ks[4], (C,), jnp.float32)
    mean1 = 0.1 * jax.random.normal(ks[5], (C,), jnp.float32)
    var1 = jax.random.uniform(ks[6], (C,), jnp.float32, minval=0.5, maxval=1.5)
    gamma2 = 1.0 + 0.1 * jax.random.normal(ks[7], (C,), jnp.float32)
    beta2 = 0.1 * jax.random.normal(ks[8], (C,), jnp.float32)
    mean2 = 0.1 * jax.random.normal(ks[9], (C,), jnp.float32)
    var2 = jax.random.uniform(ks[10], (C,), jnp.float32, minval=0.5, maxval=1.5)

    out = residual_block_forward(x, w1, w2, gamma1, beta1, mean1, var1,
                                 gamma2, beta2, mean2, var2)
    jax.block_until_ready(out)

    ref = _reference_forward(x, w1, w2, gamma1, beta1, mean1, var1,
                             gamma2, beta2, mean2, var2)
    assert out.shape == ref.shape, (out.shape, ref.shape)
    max_err = float(jnp.max(jnp.abs(out - ref)))
    # bf16 MXU operands (f32 accumulation) across two chained convs.
    assert jnp.allclose(out, ref, atol=3e-2, rtol=3e-2), f"max abs err {max_err}"

    print("KERNEL_OK")
</pallas_src>

<mosaic_0001>
module attributes {stable_mosaic.version = 11 : i64} {
  func.func @_residual_block_kernel(%arg0: i32, %arg1: memref<1x4x256xf32, #tpu.memory_space<vmem>>, %arg2: memref<4x256xf32, #tpu.memory_space<vmem>>, %arg3: memref<4x36xbf16, #tpu.memory_space<vmem>>, %arg4: memref<4x36xbf16, #tpu.memory_space<vmem>>, %arg5: memref<4x1xf32, #tpu.memory_space<vmem>>, %arg6: memref<4x1xf32, #tpu.memory_space<vmem>>, %arg7: memref<4x1xf32, #tpu.memory_space<vmem>>, %arg8: memref<4x1xf32, #tpu.memory_space<vmem>>, %arg9: memref<1x4x256xf32, #tpu.memory_space<vmem>>) attributes {dimension_semantics = [#tpu.dimension_semantics<parallel>], iteration_bounds = array<i64: 2>, scalar_prefetch = 0 : i64, scratch_operands = 0 : i64, tpu.core_type = #tpu.core_type<tc>, window_params = [{transform_indices = @transform_0, window_bounds = array<i64: 1, 4, 256>}, {pipeline_mode = #tpu.pipeline_mode<synchronous>, transform_indices = @transform_1, window_bounds = array<i64: 4, 256>}, {pipeline_mode = #tpu.pipeline_mode<synchronous>, transform_indices = @transform_2, window_bounds = array<i64: 4, 36>}, {pipeline_mode = #tpu.pipeline_mode<synchronous>, transform_indices = @transform_3, window_bounds = array<i64: 4, 36>}, {pipeline_mode = #tpu.pipeline_mode<synchronous>, transform_indices = @transform_4, window_bounds = array<i64: 4, 1>}, {pipeline_mode = #tpu.pipeline_mode<synchronous>, transform_indices = @transform_5, window_bounds = array<i64: 4, 1>}, {pipeline_mode = #tpu.pipeline_mode<synchronous>, transform_indices = @transform_6, window_bounds = array<i64: 4, 1>}, {pipeline_mode = #tpu.pipeline_mode<synchronous>, transform_indices = @transform_7, window_bounds = array<i64: 4, 1>}, {transform_indices = @transform_8, window_bounds = array<i64: 1, 4, 256>}]} {
    %c0 = arith.constant 0 : index
    %c0_0 = arith.constant 0 : index
    %c0_1 = arith.constant 0 : index
    %0 = vector.load %arg1[%c0, %c0_0, %c0_1] : memref<1x4x256xf32, #tpu.memory_space<vmem>>, vector<1x4x256xf32>
    %1 = vector.shape_cast %0 : vector<1x4x256xf32> to vector<4x256xf32>
    %c0_2 = arith.constant 0 : index
    %c0_3 = arith.constant 0 : index
    %2 = vector.load %arg2[%c0_2, %c0_3] : memref<4x256xf32, #tpu.memory_space<vmem>>, vector<1x256xf32>
    %c1 = arith.constant 1 : index
    %c0_4 = arith.constant 0 : index
    %3 = vector.load %arg2[%c1, %c0_4] : memref<4x256xf32, #tpu.memory_space<vmem>>, vector<1x256xf32>
    %c2 = arith.constant 2 : index
    %c0_5 = arith.constant 0 : index
    %4 = vector.load %arg2[%c2, %c0_5] : memref<4x256xf32, #tpu.memory_space<vmem>>, vector<1x256xf32>
    %c3 = arith.constant 3 : index
    %c0_6 = arith.constant 0 : index
    %5 = vector.load %arg2[%c3, %c0_6] : memref<4x256xf32, #tpu.memory_space<vmem>>, vector<1x256xf32>
    %cst = arith.constant 0.000000e+00 : f32
    %6 = vector.broadcast %cst : f32 to vector<4x256xf32>
    %7 = arith.cmpf oge, %1, %6 : vector<4x256xf32>
    %cst_7 = arith.constant 1.000000e-01 : f32
    %8 = vector.broadcast %cst_7 : f32 to vector<4x256xf32>
    %9 = arith.mulf %8, %1 : vector<4x256xf32>
    %10 = arith.select %7, %1, %9 : vector<4x256xi1>, vector<4x256xf32>
    %c1_i32 = arith.constant 1 : i32
    %11 = tpu.dynamic_rotate %10 by %c1_i32 dim 1 : vector<4x256xf32>, i32 -> vector<4x256xf32>
    %12 = vector.broadcast %2 : vector<1x256xf32> to vector<4x256xf32>
    %13 = arith.mulf %11, %12 : vector<4x256xf32>
    %c255_i32 = arith.constant 255 : i32
    %14 = tpu.dynamic_rotate %10 by %c255_i32 dim 1 : vector<4x256xf32>, i32 -> vector<4x256xf32>
    %15 = vector.broadcast %3 : vector<1x256xf32> to vector<4x256xf32>
    %16 = arith.mulf %14, %15 : vector<4x256xf32>
    %17 = tpu.concatenate %13, %10, %16 in 0 : vector<4x256xf32>, vector<4x256xf32>, vector<4x256xf32> -> vector<12x256xf32>
    %c16_i32 = arith.constant 16 : i32
    %18 = tpu.dynamic_rotate %17 by %c16_i32 dim 1 : vector<12x256xf32>, i32 -> vector<12x256xf32>
    %19 = vector.broadcast %4 : vector<1x256xf32> to vector<12x256xf32>
    %20 = arith.mulf %18, %19 : vector<12x256xf32>
    %c240_i32 = arith.constant 240 : i32
    %21 = tpu.dynamic_rotate %17 by %c240_i32 dim 1 : vector<12x256xf32>, i32 -> vector<12x256xf32>
    %22 = vector.broadcast %5 : vector<1x256xf32> to vector<12x256xf32>
    %23 = arith.mulf %21, %22 : vector<12x256xf32>
    %24 = tpu.concatenate %20, %17, %23 in 0 : vector<12x256xf32>, vector<12x256xf32>, vector<12x256xf32> -> vector<36x256xf32>
    %c0_8 = arith.constant 0 : index
    %c0_9 = arith.constant 0 : index
    %25 = vector.load %arg3[%c0_8, %c0_9] : memref<4x36xbf16, #tpu.memory_space<vmem>>, vector<4x36xbf16>
    %26 = arith.truncf %24 : vector<36x256xf32> to vector<36x256xbf16>
    %cst_10 = arith.constant dense<0.000000e+00> : vector<4x256xf32>
    %27 = tpu.matmul %25, %26, %cst_10 {dimension_numbers = #tpu.dot_dimension_numbers<[1], [0], [0], [1], [0, 0, 1, 1], [], []>} : vector<4x36xbf16>, vector<36x256xbf16>, vector<4x256xf32> -> vector<4x256xf32>
    %cst_11 = arith.constant 0.000000e+00 : f32
    %28 = vector.broadcast %cst_11 : f32 to vector<4x256xf32>
    %29 = arith.cmpf oge, %27, %28 : vector<4x256xf32>
    %cst_12 = arith.constant 1.000000e-01 : f32
    %30 = vector.broadcast %cst_12 : f32 to vector<4x256xf32>
    %31 = arith.mulf %30, %27 : vector<4x256xf32>
    %32 = arith.select %29, %27, %31 : vector<4x256xi1>, vector<4x256xf32>
    %c0_13 = arith.constant 0 : index
    %c0_14 = arith.constant 0 : index
    %33 = vector.load %arg5[%c0_13, %c0_14] : memref<4x1xf32, #tpu.memory_space<vmem>>, vector<4x1xf32>
    %34 = vector.broadcast %33 : vector<4x1xf32> to vector<4x256xf32>
    %35 = arith.mulf %32, %34 : vector<4x256xf32>
    %c0_15 = arith.constant 0 : index
    %c0_16 = arith.constant 0 : index
    %36 = vector.load %arg6[%c0_15, %c0_16] : memref<4x1xf32, #tpu.memory_space<vmem>>, vector<4x1xf32>
    %37 = vector.broadcast %36 : vector<4x1xf32> to vector<4x256xf32>
    %38 = arith.addf %35, %37 : vector<4x256xf32>
    %cst_17 = arith.constant 0.000000e+00 : f32
    %39 = vector.broadcast %cst_17 : f32 to vector<4x256xf32>
    %40 = arith.cmpf oge, %38, %39 : vector<4x256xf32>
    %cst_18 = arith.constant 1.000000e-01 : f32
    %41 = vector.broadcast %cst_18 : f32 to vector<4x256xf32>
    %42 = arith.mulf %41, %38 : vector<4x256xf32>
    %43 = arith.select %40, %38, %42 : vector<4x256xi1>, vector<4x256xf32>
    %c1_i32_19 = arith.constant 1 : i32
    %44 = tpu.dynamic_rotate %43 by %c1_i32_19 dim 1 : vector<4x256xf32>, i32 -> vector<4x256xf32>
    %45 = vector.broadcast %2 : vector<1x256xf32> to vector<4x256xf32>
    %46 = arith.mulf %44, %45 : vector<4x256xf32>
    %c255_i32_20 = arith.constant 255 : i32
    %47 = tpu.dynamic_rotate %43 by %c255_i32_20 dim 1 : vector<4x256xf32>, i32 -> vector<4x256xf32>
    %48 = vector.broadcast %3 : vector<1x256xf32> to vector<4x256xf32>
    %49 = arith.mulf %47, %48 : vector<4x256xf32>
    %50 = tpu.concatenate %46, %43, %49 in 0 : vector<4x256xf32>, vector<4x256xf32>, vector<4x256xf32> -> vector<12x256xf32>
    %c16_i32_21 = arith.constant 16 : i32
    %51 = tpu.dynamic_rotate %50 by %c16_i32_21 dim 1 : vector<12x256xf32>, i32 -> vector<12x256xf32>
    %52 = vector.broadcast %4 : vector<1x256xf32> to vector<12x256xf32>
    %53 = arith.mulf %51, %52 : vector<12x256xf32>
    %c240_i32_22 = arith.constant 240 : i32
    %54 = tpu.dynamic_rotate %50 by %c240_i32_22 dim 1 : vector<12x256xf32>, i32 -> vector<12x256xf32>
    %55 = vector.broadcast %5 : vector<1x256xf32> to vector<12x256xf32>
    %56 = arith.mulf %54, %55 : vector<12x256xf32>
    %57 = tpu.concatenate %53, %50, %56 in 0 : vector<12x256xf32>, vector<12x256xf32>, vector<12x256xf32> -> vector<36x256xf32>
    %c0_23 = arith.constant 0 : index
    %c0_24 = arith.constant 0 : index
    %58 = vector.load %arg4[%c0_23, %c0_24] : memref<4x36xbf16, #tpu.memory_space<vmem>>, vector<4x36xbf16>
    %59 = arith.truncf %57 : vector<36x256xf32> to vector<36x256xbf16>
    %cst_25 = arith.constant dense<0.000000e+00> : vector<4x256xf32>
    %60 = tpu.matmul %58, %59, %cst_25 {dimension_numbers = #tpu.dot_dimension_numbers<[1], [0], [0], [1], [0, 0, 1, 1], [], []>} : vector<4x36xbf16>, vector<36x256xbf16>, vector<4x256xf32> -> vector<4x256xf32>
    %cst_26 = arith.constant 0.000000e+00 : f32
    %61 = vector.broadcast %cst_26 : f32 to vector<4x256xf32>
    %62 = arith.cmpf oge, %60, %61 : vector<4x256xf32>
    %cst_27 = arith.constant 1.000000e-01 : f32
    %63 = vector.broadcast %cst_27 : f32 to vector<4x256xf32>
    %64 = arith.mulf %63, %60 : vector<4x256xf32>
    %65 = arith.select %62, %60, %64 : vector<4x256xi1>, vector<4x256xf32>
    %c0_28 = arith.constant 0 : index
    %c0_29 = arith.constant 0 : index
    %66 = vector.load %arg7[%c0_28, %c0_29] : memref<4x1xf32, #tpu.memory_space<vmem>>, vector<4x1xf32>
    %67 = vector.broadcast %66 : vector<4x1xf32> to vector<4x256xf32>
    %68 = arith.mulf %65, %67 : vector<4x256xf32>
    %c0_30 = arith.constant 0 : index
    %c0_31 = arith.constant 0 : index
    %69 = vector.load %arg8[%c0_30, %c0_31] : memref<4x1xf32, #tpu.memory_space<vmem>>, vector<4x1xf32>
    %70 = vector.broadcast %69 : vector<4x1xf32> to vector<4x256xf32>
    %71 = arith.addf %68, %70 : vector<4x256xf32>
    %72 = arith.addf %71, %1 : vector<4x256xf32>
    %c0_32 = arith.constant 0 : index
    %c0_33 = arith.constant 0 : index
    %c0_34 = arith.constant 0 : index
    %73 = vector.load %arg9[%c0_32, %c0_33, %c0_34] : memref<1x4x256xf32, #tpu.memory_space<vmem>>, vector<1x4x256xf32>
    %74 = vector.shape_cast %73 : vector<1x4x256xf32> to vector<4x256xf32>
    %75 = vector.shape_cast %72 : vector<4x256xf32> to vector<1x4x256xf32>
    tpu.vector_store %arg9[%c0_32, %c0_33, %c0_34], %75 {strides = array<i32>} : memref<1x4x256xf32, #tpu.memory_space<vmem>>, vector<1x4x256xf32>,
    return
  }
  func.func @transform_0(%arg0: i32) -> (i32, i32, i32) {
    %c0_i32 = arith.constant 0 : i32
    %c0_i32_0 = arith.constant 0 : i32
    %c0_i32_1 = arith.constant 0 : i32
    return %arg0, %c0_i32, %c0_i32_0 : i32, i32, i32
  }
  func.func @transform_1(%arg0: i32) -> (i32, i32) {
    %c0_i32 = arith.constant 0 : i32
    %c0_i32_0 = arith.constant 0 : i32
    %c0_i32_1 = arith.constant 0 : i32
    return %c0_i32, %c0_i32_0 : i32, i32
  }
  func.func @transform_2(%arg0: i32) -> (i32, i32) {
    %c0_i32 = arith.constant 0 : i32
    %c0_i32_0 = arith.constant 0 : i32
    %c0_i32_1 = arith.constant 0 : i32
    return %c0_i32, %c0_i32_0 : i32, i32
  }
  func.func @transform_3(%arg0: i32) -> (i32, i32) {
    %c0_i32 = arith.constant 0 : i32
    %c0_i32_0 = arith.constant 0 : i32
    %c0_i32_1 = arith.constant 0 : i32
    return %c0_i32, %c0_i32_0 : i32, i32
  }
  func.func @transform_4(%arg0: i32) -> (i32, i32) {
    %c0_i32 = arith.constant 0 : i32
    %c0_i32_0 = arith.constant 0 : i32
    %c0_i32_1 = arith.constant 0 : i32
    return %c0_i32, %c0_i32_0 : i32, i32
  }
  func.func @transform_5(%arg0: i32) -> (i32, i32) {
    %c0_i32 = arith.constant 0 : i32
    %c0_i32_0 = arith.constant 0 : i32
    %c0_i32_1 = arith.constant 0 : i32
    return %c0_i32, %c0_i32_0 : i32, i32
  }
  func.func @transform_6(%arg0: i32) -> (i32, i32) {
    %c0_i32 = arith.constant 0 : i32
    %c0_i32_0 = arith.constant 0 : i32
    %c0_i32_1 = arith.constant 0 : i32
    return %c0_i32, %c0_i32_0 : i32, i32
  }
  func.func @transform_7(%arg0: i32) -> (i32, i32) {
    %c0_i32 = arith.constant 0 : i32
    %c0_i32_0 = arith.constant 0 : i32
    %c0_i32_1 = arith.constant 0 : i32
    return %c0_i32, %c0_i32_0 : i32, i32
  }
  func.func @transform_8(%arg0: i32) -> (i32, i32, i32) {
    %c0_i32 = arith.constant 0 : i32
    %c0_i32_0 = arith.constant 0 : i32
    %c0_i32_1 = arith.constant 0 : i32
    return %arg0, %c0_i32, %c0_i32_0 : i32, i32, i32
  }
}

</mosaic_0001>

<bundles_post_ra>
// kernel: tpu_custom_call.1
= control target key start
LH: loop header
LB: loop body
LE: loop exit
PB: predicated region body
PF: predicated region fallthrough
CT: control target
= control target key end

     0   :  { %13 = vsyncpa [#allocation3], 0  ;;  %s1361_s0 = inlined_call_operand.hbm [shape: f32[2,4,256], index: 0, kind: input, shape index: {}, may-alias: {0,8}]   ;;  %s1362_s1 = inlined_call_operand.vmem [shape: f32[4,256], index: 1, kind: input, shape index: {}]   ;;  %s1363_s2 = inlined_call_operand.vmem [shape: bf16[4,36], index: 2, kind: input, shape index: {}]   ;;  %s1364_s3 = inlined_call_operand.vmem [shape: bf16[4,36], index: 3, kind: input, shape index: {}]   ;;  %s1365_s4 = inlined_call_operand.vmem [shape: f32[4,1], index: 4, kind: input, shape index: {}]   ;;  %s1366_s5 = inlined_call_operand.vmem [shape: f32[4,1], index: 5, kind: input, shape index: {}]   ;;  %s1367_s6 = inlined_call_operand.vmem [shape: f32[4,1], index: 6, kind: input, shape index: {}]   ;;  %s1368_s7 = inlined_call_operand.vmem [shape: f32[4,1], index: 7, kind: input, shape index: {}]   ;;  %s1369_s8 = inlined_call_operand.hbm [shape: f32[2,4,256], index: 8, kind: output, shape index: {}, may-alias: {0,8}]  }
   0x1   :  { %15 = vsyncpa [#allocation3 + $0x1], 0 }
   0x2   :  { %16 = vsyncpa [#allocation4], 0 }
   0x3   :  { %18 = vsyncpa [#allocation4 + $0x1], 0  ;;  %s1012_s27 = smov 0   ;;  %s1014_s28 = smov 0  }
   0x4   :  { %s1016_s29 = smov 0   ;;  %s1018_s30 = smov 0  }
   0x5 LB: > { %s1033_s9 = sadd.s32 4294967295, %s958_s30   ;;  %s789_s10 = sadd.s32 4294967294, %s958_s30   ;;  %s958_s30 = sphi %s1018_s30, %s1388_s30   ;;  %s954_s29 = sphi %s1016_s29, %s1387_s29   ;;  %s950_s28 = sphi %s1014_s28, %s1386_s28   ;;  %s946_s27 = sphi %s1012_s27, %s1385_s27  }
   0x6   : > { %s1037_s11 = sadd.s32 1, %s958_s30   ;;  %s31_s12 = sadd.s32 1, %s954_s29 }
   0x7   : > { %s28_s13 = ssub.s32 %s958_s30, %s1037_s11  ;;  %p38_p0 = scmp.ne.s32.totalorder %s954_s29, %s950_s28 }
   0x8   : > { %p29_p1 = scmp.eq.s32.totalorder %s28_s13, 0  ;;  %p39_p2 = scmp.eq.s32.totalorder %s958_s30, 0 }
   0x9   : > { %p44_p3 = scmp.ne.s32.totalorder %s950_s28, %s946_s27  ;;  %p45_p4 = scmp.eq.s32.totalorder %s1033_s9, 0 }
   0xa   : > { %s1049_s14 = scalar_select %p29_p1, %s954_s29, %s31_s12  }
   0xb   : > { %p1051_p5 = por %p39_p2, %p38_p0  ;;  %p1055_p6 = por %p45_p4, %p44_p3 }
   0xc   : > { %1372 = sst [smem:[#allocation8_spill]] %s1049_s14  ;;  %p215_p7 = scmp.eq.s32.totalorder %s1033_s9, 1 }
   0xd   : > { %s1374_s16 = scalar_select %p1055_p6, 1, 0 }
   0xe   : > { %p221_p8 = scmp.eq.s32.totalorder %s789_s10, 1  ;;  %p824_p10 = scmp.lt.s32.totalorder %s958_s30, 2 }
   0xf   : > { %p1062_p11 = por %p215_p7, %p38_p0  ;;  %s262_s19 = sand.u32 1, %s954_s29  }
  0x10   : > { %p1066_p12 = por %p221_p8, %p44_p3  ;;  %s810_s20 = sshll.u32 %s958_s30, 7 }
  0x11   : > { %s1375_s17 = scalar_select %p1062_p11, 1, 0 }
  0x12   : > { %s1376_s18 = scalar_select %p1066_p12, 1, 0 }
  0x13   : > { %s792_s21 = sshll.u32 %s262_s19, 3  ;;  %s1075_s24 = scalar_lea.hbm %s1361_s0, %s810_s20 }
  0x14   : > { %s266_s25 = scalar_lea.vmem [#allocation2], %s792_s21  ;;  %p1079_p13 = pnand %p824_p10, %p1051_p5 }
  0x15   : > { %s274_s26 = sshll.u32 %s266_s25, 4  ;;  %s263_s12 = scalar_lea.sflag [#allocation3], %s262_s19  ;;  %s1083_s26 = int_to_ptr.vmem [resolvable:$true] %s274_s26 }
  0x16   : > { %s866_s13 = scalar_lea.hbm %s1075_s24, 128  ;;  %p868_p3 = pneg %p1079_p13 }
  0x17   : > { %p867_p2 = scmp.ne.s32.totalorder %s1075_s24, %s866_s13  ;;  %s871_s15 = scalar_lea.hbm %s1361_s0, 256 }
  0x18   : > { %p872_p5 = scmp.lt.s32.totalorder %s1075_s24, %s1361_s0  ;;  %p873_p8 = scmp.lt.s32.totalorder %s871_s15, %s866_s13 }
  0x19   : > { %p869_p4 = pnand %p868_p3, %p867_p2 }
  0x1a   : > { %p874_p10 = por %p873_p8, %p872_p5 }
  0x1b   : > { %p870_p7 = pneg %p869_p4 }
  0x1d   : > { %p875_p9 = pnand %p874_p10, %p870_p7 }
  0x1f   : > { %878 = shalt.err (!%p875_p9)
}
  0x20   : > { %s879_s19 = scalar_lea.vmem %s1083_s26, 128  ;;  %s960_s25 = smov [#allocation2]  }
  0x21   : > { %p880_p0 = scmp.ne.s32.totalorder %s1083_s26, %s879_s19  ;;  %s884_s14 = sshll.u32 %s960_s25, 4  ;;  %s885_s14 = int_to_ptr.vmem [resolvable:$false] %s884_s14 }
  0x22   : > { %s886_s20 = scalar_lea.vmem %s885_s14, 256  ;;  %p887_p4 = scmp.lt.s32.totalorder %s1083_s26, %s885_s14 }
  0x23   : > { %p882_p1 = pnand %p880_p0, %p868_p3  ;;  %p888_p12 = scmp.lt.s32.totalorder %s886_s20, %s879_s19 }
  0x25   : > { %p883_p2 = pneg %p882_p1  ;;  %p889_p11 = por %p888_p12, %p887_p4 }
  0x27   : > { %p890_p6 = pnand %p889_p11, %p883_p2 }
  0x29   : > { %893 = shalt.err (!%p890_p6)
}
  0x2a   : > { %819 = dma.hbm_to_vmem [thread:$0]  (!%p1079_p13), %s1075_s24, 128, %s1083_s26, %s263_s12  }
  0x2b   : > { %p1378_p9 = scmp.lt.s32.totalorder %s958_s30, 3  ;;  %p1379_p7 = scmp.ge.s32.totalorder %s958_s30, 1 }
  0x2d   : > { %p280_p0 = pnand %p1379_p7, %p1378_p9 }
  0x2e   : > { %s1110_s13 = sand.u32 (!%p280_p0), 1, %s950_s28   ;;  %p1380_p6 = scmp.ne.s32.totalorder (!%p280_p0), %s1374_s16, 0 }
  0x2f   : > { %283 = sbr.rel (%p280_p0) target bundleno = 993 (0x3e1), region = 52  ;;  %s796_s14 = sshll.u32 (!%p280_p0), %s1110_s13, 3 }
  0x30   : > { %s286_s21 = scalar_lea.sflag (!%p280_p0), [#allocation3], %s1110_s13  ;;  %s289_s10 = scalar_lea.vmem (!%p280_p0), [#allocation2], %s796_s14 }
  0x34   : > { %937 = dma.done.wait (%p1380_p6), %s286_s21, 128  }
  0x35   : > { %939 = vsyncadd (%p1380_p6), %s286_s21, 4294967168  ;;  %v1120_v0 = vld [vmem:[%s289_s10] sm:$0xff]  ;;  %s961_s24 = smov 1   ;;  %s962_s26 = smov 127   ;;  %v341_v4 = vlaneseq  ;;  %vm381_vm3 = vcmask 1043456   ;;  %v965_v36 = vmov 0  }
  0x36   : > { %vm331_vm0 = vcmp.ge.f32.partialorder %v1120_v0, 0.0  ;;  %v332_v1 = vmul.f32 0.1, %v1120_v0  ;;  %v324_v9 = vld [vmem:[%s1362_s1] ss:$4 sm:$0x3]  ;;  %506 = vmatprep.mubr.bf16.mxu0 %v965_v36  ;;  %863 = vset.pattern.permute.xlu0 %v965_v36 }
  0x37   : > { %v348_v5 = vshrl.u32 %v341_v4, 7  ;;  %v1129_v6 = vand.u32 127, %v341_v4  ;;  %v798_v10 = vld [vmem:[%s1362_s1 + $0x1] ss:$4 sm:$0x3]  ;;  %s963_s23 = smov 112   ;;  %864 = vset.pattern.permute.xlu1 %v965_v36  ;;  %663 = vmatprep.mubr.bf16.mxu1 %v965_v36 }
  0x38   : > { %v333_v2 = vsel %vm331_vm0, %v1120_v0, %v332_v1  ;;  %s964_s19 = smov 16   ;;  %v521_v37 = vld [vmem:[%s1365_s4] sm:$0xf]  ;;  %vm467_vm5 = vcmask 1041408   ;;  %vm463_vm7 = vcmask 293888   ;;  %s811_s16 = sshll.u32 %s1033_s9, 7 }
  0x39   : > { %337 = vrot.lane.b32.xlu1 %v333_v2, %s961_s24  ;;  %359 = vrot.lane.b32.xlu0 %v333_v2, %s962_s26  ;;  %v335_v3 = vcombine.high %v333_v2, %v333_v2  ;;  %v1131_v7 = vsub.s32 0, %v348_v5  ;;  %v1133_v8 = vsub.s32 1, %v348_v5  ;;  %vm343_vm1 = vcmp.lt.s32.totalorder %v1129_v6, 1  ;;  %v529_v38 = vld [vmem:[%s1366_s5] sm:$0xf]  ;;  %s321_s12 = scalar_lea.vmem [#allocation5], %s796_s14  ;;  %s717_s20 = scalar_lea.hbm %s1369_s8, %s811_s16 }
  0x3a   : > { %vm363_vm2 = vcmp.lt.s32.totalorder %v1129_v6, 127  ;;  %v379_v19 = vcombine.low %v333_v2, %v333_v2  ;;  %v800_v39 = vld [vmem:[%s1362_s1 + $0x3] ss:$4 sm:$0x3]  ;;  %vm420_vm4 = vcmp.lt.s32.totalorder %v1129_v6, 112  ;;  %vm392_vm6 = vcmp.lt.s32.totalorder %v1129_v6, 16 }
  0x3b   : > { %v1144_v13 = vrot.slane %v324_v9, %v1131_v7  ;;  %v1147_v14 = vrot.slane %v324_v9, %v1133_v8  ;;  %v1150_v15 = vrot.slane %v798_v10, %v1131_v7  ;;  %v1153_v16 = vrot.slane %v798_v10, %v1133_v8  ;;  %v799_v49 = vld [vmem:[%s1362_s1 + $0x2] ss:$4 sm:$0x3]  ;;  %s719_s15 = sshll.u32 %s321_s12, 4  ;;  %p1381_p12 = scmp.ne.s32.totalorder %s1375_s17, 0  ;;  %s720_s15 = int_to_ptr.vmem [resolvable:$true] %s719_s15 }
  0x3c   : > { %v1204_v40 = vrot.slane %v800_v39, %v1131_v7  ;;  %v1207_v41 = vrot.slane %v800_v39, %v1133_v8  ;;  %v1222_v54 = vrot.slane %v799_v49, %v1131_v7  ;;  %v1225_v55 = vrot.slane %v799_v49, %v1133_v8  ;;  %s966_s9 = smov [#allocation5]  }
  0x3d   : > { %339 = vrot.lane.b32.xlu1 %v335_v3, %s961_s24  ;;  %361 = vrot.lane.b32.xlu0 %v335_v3, %s962_s26  ;;  %s898_s21 = sshll.u32 %s966_s9, 4  ;;  %s899_s21 = int_to_ptr.vmem [resolvable:$false] %s898_s21 }
  0x3e   : > { %s900_s14 = scalar_lea.vmem %s899_s21, 256  ;;  %p901_p3 = scmp.lt.s32.totalorder %s720_s15, %s899_s21 }
  0xab   : > { %v338_v11 = vpop.permute.xlu1 %337  ;;  %v360_v12 = vpop.permute.xlu0 %359 }
  0xaf   : > { %v340_v17 = vpop.permute.xlu1 %339  ;;  %v362_v18 = vpop.permute.xlu0 %361 }
  0xb0   : > { %v344_v20 = vsel %vm343_vm1, %v338_v11, %v340_v17  ;;  %v345_v21 = vsel %vm343_vm1, %v340_v17, %v338_v11  ;;  %v364_v22 = vsel %vm363_vm2, %v360_v12, %v362_v18  ;;  %v365_v23 = vsel %vm363_vm2, %v362_v18, %v360_v12 }
  0xb1   : > { %v357_v24 = vmul.f32 %v1144_v13, %v345_v21  ;;  %v358_v25 = vmul.f32 %v1147_v14, %v344_v20  ;;  %v377_v26 = vmul.f32 %v1150_v15, %v364_v22  ;;  %v378_v27 = vmul.f32 %v1153_v16, %v365_v23  ;;  %v456_v20 = vld [vmem:[%s1363_s2] sm:$0x3] }
  0xb3   : > { %v446_v28 = vrot.slane %v377_v26, 4  ;;  %v448_v29 = vrot.slane %v378_v27, 4  ;;  %418 = vrot.lane.b32.xlu1 %v378_v27, %s963_s23  ;;  %414 = vrot.lane.b32.xlu0 %v377_v26, %s963_s23  ;;  %v1170_v30 = vsel %vm381_vm3, %v358_v25, %v333_v2  ;;  %v1173_v31 = vsel %vm381_vm3, %v357_v24, %v379_v19 }
  0xb4   : > { %v445_v32 = vrot.slane %v1170_v30, 4  ;;  %v444_v33 = vrot.slane %v1173_v31, 4 }
  0xb6   : > { %v449_v34 = vsel %vm381_vm3, %v445_v32, %v448_v29  ;;  %v447_v35 = vsel %vm381_vm3, %v444_v33, %v446_v28 }
  0xb7   : > { %390 = vrot.lane.b32.xlu1 %v378_v27, %s964_s19  ;;  %386 = vrot.lane.b32.xlu0 %v377_v26, %s964_s19 }
  0xbb   : > { %416 = vrot.lane.b32.xlu1 %v1170_v30, %s963_s23  ;;  %412 = vrot.lane.b32.xlu0 %v1173_v31, %s963_s23 }
  0xbf   : > { %388 = vrot.lane.b32.xlu1 %v1170_v30, %s964_s19  ;;  %384 = vrot.lane.b32.xlu0 %v1173_v31, %s964_s19 }
  0xc3   : > { %524 = vperm.xlu0 %863, %v521_v37   ;;  %532 = vperm.xlu1 %864, %v529_v38  }
 0x125   : > { %v419_v42 = vpop.permute.xlu1 %418  ;;  %v415_v43 = vpop.permute.xlu0 %414 }
 0x126   : > { %v422_v44 = vsel %vm420_vm4, %v415_v43, %v419_v42  ;;  %v424_v45 = vsel %vm420_vm4, %v419_v42, %v415_v43 }
 0x127   : > { %v438_v46 = vmul.f32 %v1204_v40, %v422_v44  ;;  %v439_v47 = vmul.f32 %v1207_v41, %v424_v45 }
 0x129   : > { %v391_v48 = vpop.permute.xlu1 %390  ;;  %v387_v50 = vpop.permute.xlu0 %386  ;;  %v462_v51 = vpack.c.bf16 %v439_v47, %v439_v47  ;;  %v461_v52 = vpack.c.bf16 %v438_v46, %v438_v46 }
 0x12a   : > { %v394_v56 = vsel %vm392_vm6, %v387_v50, %v391_v48  ;;  %v396_v57 = vsel %vm392_vm6, %v391_v48, %v387_v50 }
 0x12b   : > { %801 = vmatprep.subr.msk.bf16.mxu0 %vm467_vm5, %v462_v51  ;;  %v469_v53 = vsel %vm467_vm5, %v461_v52, 0  ;;  %v410_v1 = vmul.f32 %v1222_v54, %v396_v57  ;;  %v411_v2 = vmul.f32 %v1225_v55, %v394_v56 }
 0x12c   : > { %485 = vmatpush1.bf16.msra.mxu0 %v469_v53 }
 0x12d   : > { %v417_v58 = vpop.permute.xlu1 %416  ;;  %v413_v59 = vpop.permute.xlu0 %412  ;;  %v455_v12 = vsel %vm381_vm3, %v411_v2, %v445_v32  ;;  %v454_v17 = vsel %vm381_vm3, %v410_v1, %v444_v33 }
 0x12e   : > { %v421_v60 = vsel %vm420_vm4, %v413_v59, %v417_v58  ;;  %v423_v61 = vsel %vm420_vm4, %v417_v58, %v413_v59 }
 0x12f   : > { %v436_v62 = vmul.f32 %v1204_v40, %v421_v60  ;;  %v437_v63 = vmul.f32 %v1207_v41, %v423_v61 }
 0x131   : > { %v389_v3 = vpop.permute.xlu1 %388  ;;  %v385_v4 = vpop.permute.xlu0 %384  ;;  %v460_v5 = vpack.c.bf16 %v437_v63, %v449_v34  ;;  %v459_v7 = vpack.c.bf16 %v436_v62, %v447_v35 }
 0x132   : > { %v393_v8 = vsel %vm392_vm6, %v385_v4, %v389_v3  ;;  %v395_v9 = vsel %vm392_vm6, %v389_v3, %v385_v4 }
 0x133   : > { %v408_v10 = vmul.f32 %v1222_v54, %v395_v9  ;;  %v409_v11 = vmul.f32 %v1225_v55, %v393_v8  ;;  %486 = vmatprep.subr.bf16.mxu0 %v460_v5 }
 0x134   : > { %487 = vmatpush1.bf16.msra.mxu0 %v459_v7 }
 0x135   : > { %v458_v18 = vpack.c.bf16 %v455_v12, %v409_v11  ;;  %v457_v19 = vpack.c.bf16 %v454_v17, %v408_v10 }
 0x137   : > { %488 = vmatprep.subr.bf16.mxu0 %v458_v18 }
 0x138   : > { %489 = vmatpush1.bf16.msra.mxu0 %v457_v19 }
 0x13b   : > { %802 = vmatmul.mubr.msk.bf16.vlgmr.msra.gmra.mxu0 %vm463_vm7, %v456_v20 }
 0x13e   : > { %v525_v23 = vpop.permute.xlu0 %524  ;;  %v533_v27 = vpop.permute.xlu1 %532 }
 0x1fb   : > { %v508_v21 = vpop.f32.mrf.mxu0 }
 0x1fc   : > { %vm515_vm8 = vcmp.ge.f32.partialorder %v508_v21, 0.0  ;;  %v517_v22 = vmul.f32 0.1, %v508_v21 }
 0x1fd   : > { %v510_v24 = vpop.f32.mrf.mxu0 }
 0x1fe   : > { %vm516_vm9 = vcmp.ge.f32.partialorder %v510_v24, 0.0  ;;  %v518_v25 = vmul.f32 0.1, %v510_v24  ;;  %v519_v26 = vsel %vm515_vm8, %v508_v21, %v517_v22 }
 0x1ff   : > { %v527_v28 = vmul.f32 %v525_v23, %v519_v26  ;;  %v512_v29 = vpop.f32.mrf.mxu0 }
 0x200   : > { %v520_v30 = vsel %vm516_vm9, %v510_v24, %v518_v25 }
 0x201   : > { %v528_v31 = vmul.f32 %v525_v23, %v520_v30  ;;  %v535_v32 = vadd.f32 %v533_v27, %v527_v28  ;;  %v513_v33 = vpop.f32.mrf.mxu0 }
 0x203   : > { %v536_v34 = vadd.f32 %v533_v27, %v528_v31  ;;  %vm537_vm10 = vcmp.ge.f32.partialorder %v535_v32, 0.0  ;;  %v539_v35 = vmul.f32 0.1, %v535_v32 }
 0x205   : > { %v541_v36 = vsel %vm537_vm10, %v535_v32, %v539_v35  ;;  %vm538_vm11 = vcmp.ge.f32.partialorder %v536_v34, 0.0  ;;  %v540_v37 = vmul.f32 0.1, %v536_v34 }
 0x206   : > { %551 = vrot.lane.b32.xlu1 %v541_v36, %s962_s26  ;;  %v561_v51 = vrot.slane %v541_v36, 4 }
 0x207   : > { %v542_v38 = vsel %vm538_vm11, %v536_v34, %v540_v37 }
 0x208   : > { %553 = vrot.lane.b32.xlu0 %v542_v38, %s962_s26  ;;  %v562_v52 = vrot.slane %v542_v38, 4  ;;  %s894_s26 = scalar_lea.vmem %s720_s15, 128 }
 0x209   : > { %p895_p11 = scmp.ne.s32.totalorder %s720_s15, %s894_s26  ;;  %p902_p5 = scmp.lt.s32.totalorder %s900_s14, %s894_s26 }
 0x20a   : > { %543 = vrot.lane.b32.xlu1 %v541_v36, %s961_s24  ;;  %v615_v36 = vld [vmem:[%s1364_s3] sm:$0x3] }
 0x20b   : > { %p896_p13 = pnand %p895_p11, %p1381_p12  ;;  %p903_p8 = por %p902_p5, %p901_p3 }
 0x20c   : > { %545 = vrot.lane.b32.xlu0 %v542_v38, %s961_s24  ;;  %s705_s24 = scalar_lea.sflag [#allocation4], %s1110_s13 }
 0x20d   : > { %p897_p1 = pneg %p896_p13 }
 0x20f   : > { %p904_p10 = pnand %p903_p8, %p897_p1 }
 0x278   : > { %v552_v39 = vpop.permute.xlu1 %551 }
 0x27a   : > { %v554_v42 = vpop.permute.xlu0 %553 }
 0x27b   : > { %v555_v43 = vsel %vm363_vm2, %v552_v39, %v554_v42  ;;  %v556_v44 = vsel %vm363_vm2, %v554_v42, %v552_v39 }
 0x27c   : > { %v557_v45 = vmul.f32 %v555_v43, %v1150_v15  ;;  %v558_v46 = vmul.f32 %v556_v44, %v1153_v16  ;;  %v544_v47 = vpop.permute.xlu1 %543 }
 0x27e   : > { %589 = vrot.lane.b32.xlu0 %v558_v46, %s963_s23  ;;  %585 = vrot.lane.b32.xlu1 %v557_v45, %s963_s23  ;;  %v546_v48 = vpop.permute.xlu0 %545  ;;  %v605_v57 = vrot.slane %v557_v45, 4  ;;  %v607_v58 = vrot.slane %v558_v46, 4 }
 0x27f   : > { %v547_v49 = vsel %vm343_vm1, %v544_v47, %v546_v48  ;;  %v548_v50 = vsel %vm343_vm1, %v546_v48, %v544_v47  ;;  %v695_v48 = vcombine.high %v1120_v0, %v1120_v0 }
 0x280   : > { %v549_v53 = vmul.f32 %v548_v50, %v1144_v13  ;;  %v550_v15 = vmul.f32 %v547_v49, %v1147_v14  ;;  %v678_v13 = vld [vmem:[%s1367_s6] sm:$0xf] }
 0x281   : > { %v686_v14 = vld [vmem:[%s1368_s7] sm:$0xf] }
 0x282   : > { %573 = vrot.lane.b32.xlu0 %v558_v46, %s964_s19  ;;  %569 = vrot.lane.b32.xlu1 %v557_v45, %s964_s19  ;;  %v565_v16 = vsel %vm381_vm3, %v549_v53, %v561_v51  ;;  %v566_v56 = vsel %vm381_vm3, %v550_v15, %v562_v52 }
 0x283   : > { %v603_v59 = vrot.slane %v565_v16, 4  ;;  %v604_v60 = vrot.slane %v566_v56, 4 }
 0x285   : > { %v608_v61 = vsel %vm381_vm3, %v604_v60, %v607_v58  ;;  %v606_v62 = vsel %vm381_vm3, %v603_v59, %v605_v57 }
 0x286   : > { %583 = vrot.lane.b32.xlu1 %v565_v16, %s963_s23  ;;  %587 = vrot.lane.b32.xlu0 %v566_v56, %s963_s23 }
 0x28a   : > { %567 = vrot.lane.b32.xlu1 %v565_v16, %s964_s19  ;;  %571 = vrot.lane.b32.xlu0 %v566_v56, %s964_s19 }
 0x28e   : > { %681 = vperm.xlu1 %864, %v678_v13   ;;  %689 = vperm.xlu0 %863, %v686_v14  }
 0x2f0   : > { %v586_v63 = vpop.permute.xlu1 %585  ;;  %v590_v1 = vpop.permute.xlu0 %589 }
 0x2f1   : > { %v592_v2 = vsel %vm420_vm4, %v586_v63, %v590_v1  ;;  %v594_v3 = vsel %vm420_vm4, %v590_v1, %v586_v63 }
 0x2f2   : > { %v597_v4 = vmul.f32 %v592_v2, %v1204_v40  ;;  %v598_v5 = vmul.f32 %v594_v3, %v1207_v41 }
 0x2f4   : > { %v570_v7 = vpop.permute.xlu1 %569  ;;  %v574_v8 = vpop.permute.xlu0 %573  ;;  %v621_v9 = vpack.c.bf16 %v598_v5, %v598_v5  ;;  %v620_v10 = vpack.c.bf16 %v597_v4, %v597_v4 }
 0x2f5   : > { %v576_v12 = vsel %vm392_vm6, %v570_v7, %v574_v8  ;;  %v578_v17 = vsel %vm392_vm6, %v574_v8, %v570_v7 }
 0x2f6   : > { %803 = vmatprep.subr.msk.bf16.mxu1 %vm467_vm5, %v621_v9  ;;  %v626_v11 = vsel %vm467_vm5, %v620_v10, 0  ;;  %v581_v24 = vmul.f32 %v578_v17, %v1222_v54  ;;  %v582_v25 = vmul.f32 %v576_v12, %v1225_v55 }
 0x2f7   : > { %642 = vmatpush1.bf16.msra.mxu1 %v626_v11 }
 0x2f8   : > { %v584_v18 = vpop.permute.xlu1 %583  ;;  %v588_v19 = vpop.permute.xlu0 %587  ;;  %v613_v33 = vsel %vm381_vm3, %v581_v24, %v603_v59 }
 0x2f9   : > { %v591_v20 = vsel %vm420_vm4, %v584_v18, %v588_v19  ;;  %v593_v21 = vsel %vm420_vm4, %v588_v19, %v584_v18 }
 0x2fa   : > { %v595_v22 = vmul.f32 %v591_v20, %v1204_v40  ;;  %v596_v23 = vmul.f32 %v593_v21, %v1207_v41  ;;  %v614_v41 = vsel %vm381_vm3, %v582_v25, %v604_v60 }
 0x2fc   : > { %v568_v26 = vpop.permute.xlu1 %567  ;;  %v572_v27 = vpop.permute.xlu0 %571  ;;  %v619_v28 = vpack.c.bf16 %v596_v23, %v608_v61  ;;  %v618_v29 = vpack.c.bf16 %v595_v22, %v606_v62 }
 0x2fd   : > { %v575_v30 = vsel %vm392_vm6, %v568_v26, %v572_v27  ;;  %v577_v31 = vsel %vm392_vm6, %v572_v27, %v568_v26 }
 0x2fe   : > { %v579_v32 = vmul.f32 %v577_v31, %v1222_v54  ;;  %v580_v40 = vmul.f32 %v575_v30, %v1225_v55  ;;  %643 = vmatprep.subr.bf16.mxu1 %v619_v28 }
 0x2ff   : > { %644 = vmatpush1.bf16.msra.mxu1 %v618_v29 }
 0x300   : > { %v617_v34 = vpack.c.bf16 %v614_v41, %v580_v40  ;;  %v616_v35 = vpack.c.bf16 %v613_v33, %v579_v32 }
 0x302   : > { %645 = vmatprep.subr.bf16.mxu1 %v617_v34 }
 0x303   : > { %646 = vmatpush1.bf16.msra.mxu1 %v616_v35 }
 0x306   : > { %804 = vmatmul.mubr.msk.bf16.vlgmr.msra.gmra.mxu1 %vm463_vm7, %v615_v36 }
 0x309   : > { %v682_v37 = vpop.permute.xlu1 %681  ;;  %v690_v44 = vpop.permute.xlu0 %689 }
 0x3c6   : > { %v665_v6 = vpop.f32.mrf.mxu1 }
 0x3c7   : > { %vm672_vm12 = vcmp.ge.f32.partialorder %v665_v6, 0.0  ;;  %v674_v54 = vmul.f32 0.1, %v665_v6 }
 0x3c8   : > { %v667_v55 = vpop.f32.mrf.mxu1 }
 0x3c9   : > { %v676_v38 = vsel %vm672_vm12, %v665_v6, %v674_v54  ;;  %vm673_vm13 = vcmp.ge.f32.partialorder %v667_v55, 0.0  ;;  %v675_v39 = vmul.f32 0.1, %v667_v55 }
 0x3ca   : > { %v684_v42 = vmul.f32 %v682_v37, %v676_v38  ;;  %v669_v43 = vpop.f32.mrf.mxu1 }
 0x3cb   : > { %v677_v45 = vsel %vm673_vm13, %v667_v55, %v675_v39 }
 0x3cc   : > { %v692_v46 = vadd.f32 %v690_v44, %v684_v42  ;;  %v685_v47 = vmul.f32 %v682_v37, %v677_v45  ;;  %v670_v49 = vpop.f32.mrf.mxu1 }
 0x3ce   : > { %v693_v50 = vadd.f32 %v690_v44, %v685_v47  ;;  %v697_v51 = vadd.f32 %v692_v46, %v1120_v0 }
 0x3d0   : > { %v698_v52 = vadd.f32 %v695_v48, %v693_v50 }
 0x3d2   : > { %v701_v53 = vcombine.low %v697_v51, %v698_v52 }
 0x3d4   : > { %703 = vst [vmem:[%s321_s12] sm:$0xff] %v701_v53 }
 0x3d5   : > { %907 = shalt.err (!%p904_p10)
}
 0x3d6   : > { %s908_s10 = scalar_lea.hbm %s717_s20, 128  ;;  %s912_s19 = scalar_lea.hbm %s1369_s8, 256 }
 0x3d7   : > { %p909_p2 = scmp.ne.s32.totalorder %s717_s20, %s908_s10  ;;  %p913_p7 = scmp.lt.s32.totalorder %s717_s20, %s1369_s8 }
 0x3d8   : > { %p914_p0 = scmp.lt.s32.totalorder %s912_s19, %s908_s10 }
 0x3d9   : > { %p910_p4 = pnand %p909_p2, %p1381_p12 }
 0x3da   : > { %p915_p6 = por %p914_p0, %p913_p7 }
 0x3db   : > { %p911_p9 = pneg %p910_p4 }
 0x3dd   : > { %p916_p11 = pnand %p915_p6, %p911_p9 }
 0x3df   : > { %919 = shalt.err (!%p916_p11)
}
 0x3e0   : > { %814 = dma.vmem_to_hbm [thread:$0]  (%p1381_p12), %s720_s15, 128, %s717_s20, %s705_s24  }
 0x3e1 PF: > { %s731_s22 = sand.u32 1, %s946_s27   ;;  %p1382_p13 = scmp.ne.s32.totalorder %s1376_s18, 0 }
 0x3e2   : > { %p1383_p1 = scmp.ge.s32.totalorder %s958_s30, 2  ;;  %s732_s25 = scalar_lea.sflag [#allocation4], %s731_s22 }
 0x3e4   : > { %p821_p3 = pnand %p1383_p1, %p1382_p13 }
 0x3e6   : > { %p822_p5 = pneg %p821_p3 }
 0x3e8   : > { %941 = dma.done.wait (%p822_p5), %s732_s25, 128  }
 0x3e9   : > { %943 = vsyncadd (%p822_p5), %s732_s25, 4294967168  ;;  %s1384_s26 = sld [smem:[#allocation8_spill]]  ;;  %p21_p8 = scmp.ge.s32.totalorder %s1037_s11, 4  }
 0x3ea   : > { %s1385_s27 = smov %s950_s28  ;;  %s1386_s28 = smov %s954_s29 }
 0x3eb   : > { %s1388_s30 = smov %s1037_s11  ;;  %23 = sbr.rel (!%p21_p8) target bundleno = 5 (0x5), region = 100 }
 0x3ef   : > { %s1387_s29 = smov %s1384_s26 }
 0x3f0   :  { %737 = vsyncpa [#allocation3], 1 }
 0x3f1   :  { %739 = vsyncpa [#allocation3 + $0x1], 1 }
 0x3f2   :  { %740 = vsyncpa [#allocation4], 1 }
 0x3f3   :  { %742 = vsyncpa [#allocation4 + $0x1], 1 }

</bundles_post_ra>
